<compile_context>
chip_gen: v5e
topology: v5e:2x2
jax: 0.10.0
libtpu: 0.0.40
codegen_flags: <defaults>
</compile_context>

<pallas_src>
import jax
import jax.numpy as jnp
import numpy as np
from jax.experimental import pallas as pl
from jax.experimental.pallas import tpu as pltpu

_VMEM_LIMIT = 32 * 1024 * 1024
_RESIDENT_X_BYTES = 2 * 1024 * 1024   # keep full x_bf16 VMEM-resident below this

_LAYER_PARAMS = pltpu.CompilerParams(
    dimension_semantics=("parallel", "arbitrary"),
    vmem_limit_bytes=_VMEM_LIMIT,
)
_HEAD_PARAMS = pltpu.CompilerParams(
    dimension_semantics=("arbitrary",),
    vmem_limit_bytes=_VMEM_LIMIT,
)


def _round_up(n, m):
    return (n + m - 1) // m * m


def _layer_tiles(num_nodes, feat_pad):
    """Padded node count + (row tile, reduction tile) for the SAGE layers."""
    n128 = _round_up(max(num_nodes, 1), 128)
    if n128 <= 512:
        # Small graph: one row tile, whole node axis contracted in one step.
        return n128, n128, n128
    n_pad = _round_up(n128, 512)
    tile_m = 512
    if n_pad * feat_pad * 2 <= _RESIDENT_X_BYTES:
        tile_k = n_pad                      # x_bf16 fully resident in VMEM
    elif n_pad % 1024 == 0:
        tile_k = 1024
    else:
        tile_k = 512
    return n_pad, tile_m, tile_k


def _head_tile(n_pad):
    if n_pad <= 2048:
        return n_pad
    for t in (2048, 1024, 512, 128):
        if n_pad % t == 0:
            return t
    return 128


# ---------------------------------------------------------------------------
# Pallas kernels
# ---------------------------------------------------------------------------
def sage_layer_kernel(a_ref, xk_ref, xr_ref, dinv_ref,
                      wl_ref, bl_ref, wr_ref, o_ref, acc_ref):
    """One SAGEConv layer + ReLU.

    grid = (n_pad // tile_m, n_pad // tile_k)
      axis 0 ("parallel")  : output-node row tile
      axis 1 ("arbitrary") : reduction over neighbor column tiles

    a_ref    [tile_m, tile_k] int8 : adjacency counts A[dst, src]
    xk_ref   [tile_k, Fin]    bf16 : neighbor features (column tile)
    xr_ref   [tile_m, Fin]    bf16 : root features (row tile)
    dinv_ref [tile_m, 1]      f32  : 1 / in-degree (0 for isolated nodes)
    wl/bl                          : lin_l (bf16 weight, f32 bias)
    wr                             : lin_r (bf16 weight, no bias)
    acc_ref  [tile_m, Fin]    f32  : scratch accumulator for sum_j A_ij x_j
    """
    k = pl.program_id(1)

    @pl.when(k == 0)
    def _():
        acc_ref[...] = jnp.zeros_like(acc_ref)

    # Neighbor-sum on the MXU: int8 counts -> bf16 (exact), f32 accumulation.
    a = a_ref[...].astype(jnp.bfloat16)
    acc_ref[...] += jnp.dot(a, xk_ref[...], preferred_element_type=jnp.float32)

    @pl.when(k == pl.num_programs(1) - 1)
    def _():
        # mean aggregation (division by in-degree in f32), then bf16 epilogue
        # matmuls with f32 accumulation.
        agg = (acc_ref[...] * dinv_ref[...]).astype(jnp.bfloat16)
        h = jnp.dot(agg, wl_ref[...], preferred_element_type=jnp.float32) + bl_ref[...]
        h = h + jnp.dot(xr_ref[...], wr_ref[...], preferred_element_type=jnp.float32)
        o_ref[...] = jnp.maximum(h, 0.0).astype(jnp.bfloat16)   # F.relu after conv


def head_kernel(p_ref, x_ref, w1_ref, b1_ref, w2_ref, b2_ref, o_ref, acc_ref):
    """global_add_pool (P @ h) + lin1 + ReLU + dropout(identity) + lin2.

    grid = (n_pad // tile_k,)  -- reduction over node tiles
    """
    k = pl.program_id(0)

    @pl.when(k == 0)
    def _():
        acc_ref[...] = jnp.zeros_like(acc_ref)

    acc_ref[...] += jnp.dot(p_ref[...], x_ref[...],
                            preferred_element_type=jnp.float32)

    @pl.when(k == pl.num_programs(0) - 1)
    def _():
        g = acc_ref[...].astype(jnp.bfloat16)
        h = jnp.dot(g, w1_ref[...], preferred_element_type=jnp.float32) + b1_ref[...]
        h = jnp.maximum(h, 0.0).astype(jnp.bfloat16)
        # dropout: identity in inference mode
        o_ref[...] = jnp.dot(h, w2_ref[...],
                             preferred_element_type=jnp.float32) + b2_ref[...]


# ---------------------------------------------------------------------------
# Wrappers
# ---------------------------------------------------------------------------
def sage_layer(a_i8, x_bf16, deg_inv, wl_bf16, bl_f32, wr_bf16, tile_m, tile_k):
    n_pad = a_i8.shape[0]
    fin = x_bf16.shape[1]
    h = wl_bf16.shape[1]
    grid = (n_pad // tile_m, n_pad // tile_k)
    return pl.pallas_call(
        sage_layer_kernel,
        out_shape=jax.ShapeDtypeStruct((n_pad, h), jnp.bfloat16),
        grid_spec=pltpu.PrefetchScalarGridSpec(
            num_scalar_prefetch=0,
            grid=grid,
            in_specs=[
                pl.BlockSpec((tile_m, tile_k), lambda i, k: (i, k)),   # A (int8)
                pl.BlockSpec((tile_k, fin), lambda i, k: (k, 0)),      # x (neighbors)
                pl.BlockSpec((tile_m, fin), lambda i, k: (i, 0)),      # x (root)
                pl.BlockSpec((tile_m, 1), lambda i, k: (i, 0)),        # 1 / deg
                pl.BlockSpec((fin, h), lambda i, k: (0, 0)),           # W_l (bf16)
                pl.BlockSpec((1, h), lambda i, k: (0, 0)),             # b_l (f32)
                pl.BlockSpec((fin, h), lambda i, k: (0, 0)),           # W_r (bf16)
            ],
            out_specs=pl.BlockSpec((tile_m, h), lambda i, k: (i, 0)),
            scratch_shapes=[pltpu.VMEM((tile_m, fin), jnp.float32)],
        ),
        compiler_params=_LAYER_PARAMS,
    )(a_i8, x_bf16, x_bf16, deg_inv, wl_bf16, bl_f32, wr_bf16)


def sage_head(P_bf16, h_bf16, w1_bf16, b1_f32, w2_bf16, b2_f32, tile_k):
    g_pad = P_bf16.shape[0]
    n_pad = h_bf16.shape[0]
    h = w1_bf16.shape[0]
    o = w2_bf16.shape[1]
    grid = (n_pad // tile_k,)
    return pl.pallas_call(
        head_kernel,
        out_shape=jax.ShapeDtypeStruct((g_pad, o), jnp.float32),
        grid_spec=pltpu.PrefetchScalarGridSpec(
            num_scalar_prefetch=0,
            grid=grid,
            in_specs=[
                pl.BlockSpec((g_pad, tile_k), lambda k: (0, k)),  # pooling matrix (bf16)
                pl.BlockSpec((tile_k, h), lambda k: (k, 0)),      # node features (bf16)
                pl.BlockSpec((h, h), lambda k: (0, 0)),           # W1 (bf16)
                pl.BlockSpec((1, h), lambda k: (0, 0)),           # b1 (f32)
                pl.BlockSpec((h, o), lambda k: (0, 0)),           # W2 (bf16)
                pl.BlockSpec((1, o), lambda k: (0, 0)),           # b2 (f32)
            ],
            out_specs=pl.BlockSpec((g_pad, o), lambda k: (0, 0)),
            scratch_shapes=[pltpu.VMEM((g_pad, h), jnp.float32)],
        ),
        compiler_params=_HEAD_PARAMS,
    )(P_bf16, h_bf16, w1_bf16, b1_f32, w2_bf16, b2_f32)


def graphsage_forward(x, edge_index, batch, params, num_graphs):
    """GraphSAGE.forward (medium=False, inference mode)."""
    dims = params["dims"]
    N, fin = x.shape
    fin_p = params["convs"][0]["wl"].shape[0]
    h_p = params["convs"][0]["wl"].shape[1]
    n_pad, tile_m, tile_k = _layer_tiles(N, max(fin_p, h_p))
    g_pad = _round_up(max(num_graphs, 1), 8)

    src, dst = edge_index[0], edge_index[1]
    # Dense adjacency counts A[dst, src] (source_to_target flow, no self-loops).
    counts = jnp.zeros((n_pad, n_pad), jnp.int32).at[dst, src].add(1)
    deg = jnp.sum(counts, axis=1, keepdims=True).astype(jnp.float32)
    deg_inv = jnp.where(deg > 0, 1.0 / deg, 0.0).astype(jnp.float32)
    # int8 in HBM; cast to bf16 inside the kernel (exact for multiplicity <= 127).
    a_i8 = jnp.minimum(counts, 127).astype(jnp.int8)

    h_bf16 = (jnp.zeros((n_pad, fin_p), jnp.float32)
              .at[:N, :fin].set(x.astype(jnp.float32))).astype(jnp.bfloat16)

    for layer in params["convs"]:
        h_bf16 = sage_layer(a_i8, h_bf16, deg_inv,
                            layer["wl"].astype(jnp.bfloat16),
                            layer["bl"],
                            layer["wr"].astype(jnp.bfloat16),
                            tile_m, tile_k)

    # global_add_pool matrix: P[g, n] = 1 iff node n belongs to graph g
    P = (jnp.zeros((g_pad, n_pad), jnp.float32)
         .at[batch, jnp.arange(N)].set(1.0)).astype(jnp.bfloat16)
    out = sage_head(P, h_bf16,
                    params["lin1"]["w"].astype(jnp.bfloat16), params["lin1"]["b"],
                    params["lin2"]["w"].astype(jnp.bfloat16), params["lin2"]["b"],
                    _head_tile(n_pad))
    return out[:num_graphs, :dims["output_dim"]]


# ---------------------------------------------------------------------------
# Pure-JAX reference (f32, unpadded) for correctness checking
# ---------------------------------------------------------------------------
def graphsage_reference(x, edge_index, batch, params, num_graphs):
    dims = params["dims"]
    fin, hd, od = dims["input_dim"], dims["hidden_dim"], dims["output_dim"]
    N = x.shape[0]
    src, dst = edge_index[0], edge_index[1]
    A = jnp.zeros((N, N), jnp.float32).at[dst, src].add(1.0)
    deg = A.sum(axis=1, keepdims=True)
    dinv = jnp.where(deg > 0, 1.0 / deg, 0.0)
    h = x.astype(jnp.float32)
    in_dim = fin
    for layer in params["convs"]:
        wl = layer["wl"][:in_dim, :hd]
        bl = layer["bl"][:, :hd]
        wr = layer["wr"][:in_dim, :hd]
        agg = (A @ h) * dinv
        h = jnp.maximum(agg @ wl + bl + h @ wr, 0.0)
        in_dim = hd
    P = jax.nn.one_hot(batch, num_graphs, dtype=jnp.float32).T
    g = P @ h
    w1 = params["lin1"]["w"][:hd, :hd]; b1 = params["lin1"]["b"][:, :hd]
    w2 = params["lin2"]["w"][:hd, :od]; b2 = params["lin2"]["b"][:, :od]
    g = jnp.maximum(g @ w1 + b1, 0.0)
    return g @ w2 + b2


# ---------------------------------------------------------------------------
# Deterministic parameter init (shapes follow GraphSAGE.__init__, lane-padded)
# ---------------------------------------------------------------------------
def _init_linear(key, fan_in, fan_out, fan_in_pad, fan_out_pad):
    kw, kb = jax.random.split(key)
    bound = 1.0 / float(np.sqrt(fan_in))
    w = jax.random.uniform(kw, (fan_in, fan_out), jnp.float32, -bound, bound)
    b = jax.random.uniform(kb, (1, fan_out), jnp.float32, -bound, bound)
    w_p = jnp.zeros((fan_in_pad, fan_out_pad), jnp.float32).at[:fan_in, :fan_out].set(w)
    b_p = jnp.zeros((1, fan_out_pad), jnp.float32).at[:, :fan_out].set(b)
    return w_p, b_p


def init_graphsage_params(key, input_dim, hidden_dim, output_dim, num_layers):
    fin_p = _round_up(input_dim, 128)
    h_p = _round_up(hidden_dim, 128)
    o_p = _round_up(output_dim, 128)
    convs = []
    in_dim, in_p = input_dim, fin_p
    for _ in range(num_layers):
        key, kl, kr = jax.random.split(key, 3)
        wl, bl = _init_linear(kl, in_dim, hidden_dim, in_p, h_p)   # lin_l (bias)
        wr, _ = _init_linear(kr, in_dim, hidden_dim, in_p, h_p)    # lin_r (no bias)
        convs.append(dict(wl=wl, bl=bl, wr=wr))
        in_dim, in_p = hidden_dim, h_p
    key, k1, k2 = jax.random.split(key, 3)
    w1, b1 = _init_linear(k1, hidden_dim, hidden_dim, h_p, h_p)
    w2, b2 = _init_linear(k2, hidden_dim, output_dim, h_p, o_p)
    return dict(convs=convs,
                lin1=dict(w=w1, b=b1),
                lin2=dict(w=w2, b=b2),
                dims=dict(input_dim=input_dim, hidden_dim=hidden_dim,
                          output_dim=output_dim))


# ---------------------------------------------------------------------------
# Example run
# ---------------------------------------------------------------------------
if __name__ == "__main__":
    input_dim, hidden_dim, output_dim, num_layers = 8, 32, 4, 3
    N, E, num_graphs = 16, 40, 2

    key = jax.random.PRNGKey(0)
    key, kx, ke = jax.random.split(key, 3)

    x = jax.random.normal(kx, (N, input_dim), jnp.float32)
    edge_index = jax.random.randint(ke, (2, E), 0, N, dtype=jnp.int32)
    batch = jnp.concatenate([jnp.zeros((N // 2,), jnp.int32),
                             jnp.ones((N - N // 2,), jnp.int32)])

    params = init_graphsage_params(key, input_dim, hidden_dim, output_dim, num_layers)

    out = graphsage_forward(x, edge_index, batch, params, num_graphs)
    out = jax.block_until_ready(out)
    assert out.shape == (num_graphs, output_dim)

    ref = graphsage_reference(x, edge_index, batch, params, num_graphs)
    np.testing.assert_allclose(np.asarray(out), np.asarray(ref),
                               rtol=5e-2, atol=2e-1)
    print("KERNEL_OK")
</pallas_src>

<mosaic_0001>
module attributes {stable_mosaic.version = 11 : i64} {
  func.func @sage_layer_kernel(%arg0: i32, %arg1: i32, %arg2: memref<128x128xi8, #tpu.memory_space<vmem>>, %arg3: memref<128x128xbf16, #tpu.memory_space<vmem>>, %arg4: memref<128x128xbf16, #tpu.memory_space<vmem>>, %arg5: memref<128x1xf32, #tpu.memory_space<vmem>>, %arg6: memref<128x128xbf16, #tpu.memory_space<vmem>>, %arg7: memref<1x128xf32, #tpu.memory_space<vmem>>, %arg8: memref<128x128xbf16, #tpu.memory_space<vmem>>, %arg9: memref<128x128xbf16, #tpu.memory_space<vmem>>, %arg10: memref<128x128xf32, #tpu.memory_space<vmem>>) attributes {dimension_semantics = [#tpu.dimension_semantics<parallel>, #tpu.dimension_semantics<arbitrary>], iteration_bounds = array<i64: 1, 1>, scalar_prefetch = 0 : i64, scratch_operands = 1 : i64, tpu.core_type = #tpu.core_type<tc>, window_params = [{transform_indices = @transform_0, window_bounds = array<i64: 128, 128>}, {transform_indices = @transform_1, window_bounds = array<i64: 128, 128>}, {transform_indices = @transform_2, window_bounds = array<i64: 128, 128>}, {transform_indices = @transform_3, window_bounds = array<i64: 128, 1>}, {pipeline_mode = #tpu.pipeline_mode<synchronous>, transform_indices = @transform_4, window_bounds = array<i64: 128, 128>}, {pipeline_mode = #tpu.pipeline_mode<synchronous>, transform_indices = @transform_5, window_bounds = array<i64: 1, 128>}, {pipeline_mode = #tpu.pipeline_mode<synchronous>, transform_indices = @transform_6, window_bounds = array<i64: 128, 128>}, {transform_indices = @transform_7, window_bounds = array<i64: 128, 128>}]} {
    %c0_i32 = arith.constant 0 : i32
    %0 = arith.cmpi eq, %arg1, %c0_i32 : i32
    %1 = arith.extui %0 : i1 to i32
    %c0_i32_0 = arith.constant 0 : i32
    %2 = arith.cmpi ne, %1, %c0_i32_0 : i32
    scf.if %2 {
      %cst_10 = arith.constant 0.000000e+00 : f32
      %13 = vector.broadcast %cst_10 : f32 to vector<128x128xf32>
      %c0_11 = arith.constant 0 : index
      %c0_12 = arith.constant 0 : index
      %14 = vector.load %arg10[%c0_11, %c0_12] : memref<128x128xf32, #tpu.memory_space<vmem>>, vector<128x128xf32>
      tpu.vector_store %arg10[%c0_11, %c0_12], %13 {strides = array<i32>} : memref<128x128xf32, #tpu.memory_space<vmem>>, vector<128x128xf32>,
    } else {
    }
    %c0 = arith.constant 0 : index
    %c0_1 = arith.constant 0 : index
    %3 = vector.load %arg2[%c0, %c0_1] : memref<128x128xi8, #tpu.memory_space<vmem>>, vector<128x128xi8>
    %4 = arith.sitofp %3 : vector<128x128xi8> to vector<128x128xbf16>
    %c0_2 = arith.constant 0 : index
    %c0_3 = arith.constant 0 : index
    %5 = vector.load %arg10[%c0_2, %c0_3] : memref<128x128xf32, #tpu.memory_space<vmem>>, vector<128x128xf32>
    %c0_4 = arith.constant 0 : index
    %c0_5 = arith.constant 0 : index
    %6 = vector.load %arg3[%c0_4, %c0_5] : memref<128x128xbf16, #tpu.memory_space<vmem>>, vector<128x128xbf16>
    %cst = arith.constant dense<0.000000e+00> : vector<128x128xf32>
    %7 = tpu.matmul %4, %6, %cst {dimension_numbers = #tpu.dot_dimension_numbers<[1], [0], [0], [1], [0, 0, 1, 1], [], []>} : vector<128x128xbf16>, vector<128x128xbf16>, vector<128x128xf32> -> vector<128x128xf32>
    %8 = arith.addf %5, %7 : vector<128x128xf32>
    %c0_6 = arith.constant 0 : index
    %c0_7 = arith.constant 0 : index
    %9 = vector.load %arg10[%c0_6, %c0_7] : memref<128x128xf32, #tpu.memory_space<vmem>>, vector<128x128xf32>
    tpu.vector_store %arg10[%c0_6, %c0_7], %8 {strides = array<i32>} : memref<128x128xf32, #tpu.memory_space<vmem>>, vector<128x128xf32>,
    %c0_i32_8 = arith.constant 0 : i32
    %10 = arith.cmpi eq, %arg1, %c0_i32_8 : i32
    %11 = arith.extui %10 : i1 to i32
    %c0_i32_9 = arith.constant 0 : i32
    %12 = arith.cmpi ne, %11, %c0_i32_9 : i32
    scf.if %12 {
      %c0_10 = arith.constant 0 : index
      %c0_11 = arith.constant 0 : index
      %13 = vector.load %arg10[%c0_10, %c0_11] : memref<128x128xf32, #tpu.memory_space<vmem>>, vector<128x128xf32>
      %c0_12 = arith.constant 0 : index
      %c0_13 = arith.constant 0 : index
      %14 = vector.load %arg5[%c0_12, %c0_13] : memref<128x1xf32, #tpu.memory_space<vmem>>, vector<128x1xf32>
      %15 = vector.broadcast %14 : vector<128x1xf32> to vector<128x128xf32>
      %16 = arith.mulf %13, %15 : vector<128x128xf32>
      %17 = arith.truncf %16 : vector<128x128xf32> to vector<128x128xbf16>
      %c0_14 = arith.constant 0 : index
      %c0_15 = arith.constant 0 : index
      %18 = vector.load %arg6[%c0_14, %c0_15] : memref<128x128xbf16, #tpu.memory_space<vmem>>, vector<128x128xbf16>
      %cst_16 = arith.constant dense<0.000000e+00> : vector<128x128xf32>
      %19 = tpu.matmul %17, %18, %cst_16 {dimension_numbers = #tpu.dot_dimension_numbers<[1], [0], [0], [1], [0, 0, 1, 1], [], []>} : vector<128x128xbf16>, vector<128x128xbf16>, vector<128x128xf32> -> vector<128x128xf32>
      %c0_17 = arith.constant 0 : index
      %c0_18 = arith.constant 0 : index
      %20 = vector.load %arg7[%c0_17, %c0_18] : memref<1x128xf32, #tpu.memory_space<vmem>>, vector<1x128xf32>
      %21 = vector.broadcast %20 : vector<1x128xf32> to vector<128x128xf32>
      %22 = arith.addf %19, %21 : vector<128x128xf32>
      %c0_19 = arith.constant 0 : index
      %c0_20 = arith.constant 0 : index
      %23 = vector.load %arg4[%c0_19, %c0_20] : memref<128x128xbf16, #tpu.memory_space<vmem>>, vector<128x128xbf16>
      %c0_21 = arith.constant 0 : index
      %c0_22 = arith.constant 0 : index
      %24 = vector.load %arg8[%c0_21, %c0_22] : memref<128x128xbf16, #tpu.memory_space<vmem>>, vector<128x128xbf16>
      %cst_23 = arith.constant dense<0.000000e+00> : vector<128x128xf32>
      %25 = tpu.matmul %23, %24, %cst_23 {dimension_numbers = #tpu.dot_dimension_numbers<[1], [0], [0], [1], [0, 0, 1, 1], [], []>} : vector<128x128xbf16>, vector<128x128xbf16>, vector<128x128xf32> -> vector<128x128xf32>
      %26 = arith.addf %22, %25 : vector<128x128xf32>
      %cst_24 = arith.constant 0.000000e+00 : f32
      %27 = vector.broadcast %cst_24 : f32 to vector<128x128xf32>
      %28 = arith.maximumf %26, %27 : vector<128x128xf32>
      %29 = arith.truncf %28 : vector<128x128xf32> to vector<128x128xbf16>
      %c0_25 = arith.constant 0 : index
      %c0_26 = arith.constant 0 : index
      %30 = vector.load %arg9[%c0_25, %c0_26] : memref<128x128xbf16, #tpu.memory_space<vmem>>, vector<128x128xbf16>
      tpu.vector_store %arg9[%c0_25, %c0_26], %29 {strides = array<i32>} : memref<128x128xbf16, #tpu.memory_space<vmem>>, vector<128x128xbf16>,
    } else {
    }
    return
  }
  func.func @transform_0(%arg0: i32, %arg1: i32) -> (i32, i32) {
    %c0_i32 = arith.constant 0 : i32
    return %arg0, %arg1 : i32, i32
  }
  func.func @transform_1(%arg0: i32, %arg1: i32) -> (i32, i32) {
    %c0_i32 = arith.constant 0 : i32
    %c0_i32_0 = arith.constant 0 : i32
    return %arg1, %c0_i32 : i32, i32
  }
  func.func @transform_2(%arg0: i32, %arg1: i32) -> (i32, i32) {
    %c0_i32 = arith.constant 0 : i32
    %c0_i32_0 = arith.constant 0 : i32
    return %arg0, %c0_i32 : i32, i32
  }
  func.func @transform_3(%arg0: i32, %arg1: i32) -> (i32, i32) {
    %c0_i32 = arith.constant 0 : i32
    %c0_i32_0 = arith.constant 0 : i32
    return %arg0, %c0_i32 : i32, i32
  }
  func.func @transform_4(%arg0: i32, %arg1: i32) -> (i32, i32) {
    %c0_i32 = arith.constant 0 : i32
    %c0_i32_0 = arith.constant 0 : i32
    %c0_i32_1 = arith.constant 0 : i32
    return %c0_i32, %c0_i32_0 : i32, i32
  }
  func.func @transform_5(%arg0: i32, %arg1: i32) -> (i32, i32) {
    %c0_i32 = arith.constant 0 : i32
    %c0_i32_0 = arith.constant 0 : i32
    %c0_i32_1 = arith.constant 0 : i32
    return %c0_i32, %c0_i32_0 : i32, i32
  }
  func.func @transform_6(%arg0: i32, %arg1: i32) -> (i32, i32) {
    %c0_i32 = arith.constant 0 : i32
    %c0_i32_0 = arith.constant 0 : i32
    %c0_i32_1 = arith.constant 0 : i32
    return %c0_i32, %c0_i32_0 : i32, i32
  }
  func.func @transform_7(%arg0: i32, %arg1: i32) -> (i32, i32) {
    %c0_i32 = arith.constant 0 : i32
    %c0_i32_0 = arith.constant 0 : i32
    return %arg0, %c0_i32 : i32, i32
  }
}

</mosaic_0001>

<bundles_post_ra>
// kernel: tpu_custom_call.1
= control target key start
LH: loop header
LB: loop body
LE: loop exit
PB: predicated region body
PF: predicated region fallthrough
CT: control target
= control target key end

     0   :  { %12 = vsyncpa [#allocation4], 0  ;;  %s1349_s0 = inlined_call_operand.hbm [shape: s8[128,128], index: 0, kind: input, shape index: {}]   ;;  %s1350_s1 = inlined_call_operand.vmem [shape: bf16[128,128], index: 1, kind: input, shape index: {}]   ;;  %s1351_s2 = inlined_call_operand.vmem [shape: bf16[128,128], index: 2, kind: input, shape index: {}]   ;;  %s1352_s3 = inlined_call_operand.vmem [shape: f32[128,1], index: 3, kind: input, shape index: {}]   ;;  %s1353_s4 = inlined_call_operand.hbm [shape: bf16[128,128], index: 4, kind: input, shape index: {}]   ;;  %s1354_s5 = inlined_call_operand.vmem [shape: f32[1,128], index: 5, kind: input, shape index: {}]   ;;  %s1355_s6 = inlined_call_operand.hbm [shape: bf16[128,128], index: 6, kind: input, shape index: {}]   ;;  %s1356_s7 = inlined_call_operand.hbm [shape: bf16[128,128], index: 7, kind: output, shape index: {}]  }
   0x1   :  { %13 = vsyncpa [#allocation7], 0  ;;  %s38_s26 = sshll.u32 %s1353_s4, 4  ;;  %s39_s26 = int_to_ptr.hbm [resolvable:$true] %s38_s26 }
   0x2   :  { %14 = vsyncpa [#allocation5], 0  ;;  %s1162_s27 = smov [#allocation6]   ;;  %s19_s8 = sshll.u32 %s1349_s0, 4  ;;  %s20_s8 = int_to_ptr.hbm [resolvable:$true] %s19_s8 }
   0x3   :  { %s40_s28 = sshll.u32 %s1162_s27, 4  ;;  %s1163_s9 = smov 64   ;;  %s41_s28 = int_to_ptr.vmem [resolvable:$true] %s40_s28 }
   0x4   :  { %s1164_s10 = smov 4   ;;  %s1165_s11 = smov [#allocation3]  }
   0x5   :  { %46 = dma.hbm_to_vmem [thread:$0]  %s39_s26, 1024, %s41_s28, [#allocation7], %s1163_s9, %s1163_s9, %s1164_s10  }
   0x6   :  { %s21_s12 = sshll.u32 %s1165_s11, 4  ;;  %s1166_s4 = smov 128   ;;  %s22_s12 = int_to_ptr.vmem [resolvable:$true] %s21_s12 }
   0x7   :  { %s1167_s13 = smov 8   ;;  %s53_s16 = sshll.u32 %s1355_s6, 4  ;;  %s54_s16 = int_to_ptr.hbm [resolvable:$true] %s53_s16 }
   0x8   :  { %27 = dma.hbm_to_vmem [thread:$0]  %s20_s8, 512, %s22_s12, [#allocation4], %s1166_s4, %s1166_s4, %s1167_s13  }
   0x9   :  { %s1168_s17 = smov [#allocation8]  }
   0xa   :  { %s55_s0 = sshll.u32 %s1168_s17, 4  ;;  %s56_s0 = int_to_ptr.vmem [resolvable:$true] %s55_s0 }
   0xb   :  { %61 = dma.hbm_to_vmem [thread:$0]  %s54_s16, 1024, %s56_s0, [#allocation7], %s1163_s9, %s1163_s9, %s1164_s10  }
   0xc   :  { %1156 = dma.done.wait [#allocation4], 512  }
   0xd   :  { %1157 = vsyncadd [#allocation4], 4294966784 }
   0xe   :  { %1158 = dma.done.wait [#allocation7], 2048  }
   0xf   :  { %1159 = vsyncadd [#allocation7], 4294965248  ;;  %v1169_v0 = vmov 0   ;;  %v951_v1 = vld [vmem:[%s1350_s1 + $0x38] sm:$0xff]  ;;  %v318_v2 = vld [vmem:[%s1352_s3] sm:$0xff]  ;;  %s802_s4 = sshll.u32 %s1356_s7, 4  ;;  %s803_s4 = int_to_ptr.hbm [resolvable:$true] %s802_s4 }
  0x10   :  { %1056 = vset.pattern.permute.xlu0 %v1169_v0  ;;  %1057 = vset.pattern.permute.xlu1 %v1169_v0  ;;  %v950_v3 = vld [vmem:[%s1350_s1 + $0x30] sm:$0xff]  ;;  %v949_v5 = vld [vmem:[%s1350_s1 + $0x28] sm:$0xff]  ;;  %v321_v7 = vld [vmem:[%s1352_s3 + $0x18] sm:$0xff] }
  0x11   :  { %1058 = vset.pattern.permute.xlu2 %v1169_v0  ;;  %336 = vperm.xlu0 %1056, %v318_v2   ;;  %v320_v4 = vld [vmem:[%s1352_s3 + $0x10] sm:$0xff]  ;;  %v319_v6 = vld [vmem:[%s1352_s3 + $0x8] sm:$0xff]  ;;  %v948_v8 = vld [vmem:[%s1350_s1 + $0x20] sm:$0xff] }
  0x12   :  { %218 = vmatpush.bf16.msra.mxu0 %v951_v1  ;;  %1023 = vmatpush.bf16.msra.mxu3 %v951_v1  ;;  %v947_v9 = vld [vmem:[%s1350_s1 + $0x18] sm:$0xff]  ;;  %v322_v10 = vld [vmem:[%s1352_s3 + $0x20] sm:$0xff]  ;;  %v323_v11 = vld [vmem:[%s1352_s3 + $0x28] sm:$0xff] }
  0x13   :  { %346 = vperm.xlu1 %1057, %v320_v4   ;;  %v330_v12 = vld [vmem:[%s1352_s3 + $0x60] sm:$0xff]  ;;  %v946_v13 = vld [vmem:[%s1350_s1 + $0x10] sm:$0xff]  ;;  %v97_v15 = vld [vmem:[#allocation3 + $0x18] sm:$0xff] }
  0x14   :  { %v94_v14 = vld [vmem:[#allocation3] sm:$0xff]  ;;  %396 = vperm.xlu2 %1058, %v330_v12   ;;  %v110_v18 = vunpack.c.0.s8 %v97_v15  ;;  %v111_v19 = vunpack.c.1.s8 %v97_v15  ;;  %v945_v20 = vld [vmem:[%s1350_s1 + $0x8] sm:$0xff]  ;;  %v333_v21 = vld [vmem:[%s1352_s3 + $0x78] sm:$0xff]  ;;  %v112_v35 = vunpack.c.2.s8 %v97_v15  ;;  %v113_v36 = vunpack.c.3.s8 %v97_v15 }
  0x15   :  { %v98_v16 = vunpack.c.0.s8 %v94_v14  ;;  %v99_v17 = vunpack.c.1.s8 %v94_v14  ;;  %v324_v26 = vld [vmem:[%s1352_s3 + $0x30] sm:$0xff]  ;;  %v944_v27 = vld [vmem:[%s1350_s1] sm:$0xff]  ;;  %v327_v31 = vld [vmem:[%s1352_s3 + $0x48] sm:$0xff]  ;;  %v100_v33 = vunpack.c.2.s8 %v94_v14  ;;  %v101_v34 = vunpack.c.3.s8 %v94_v14 }
  0x16   :  { %219 = vmatpush.bf16.msra.mxu0 %v950_v3  ;;  %1024 = vmatpush.bf16.msra.mxu3 %v950_v3  ;;  %v126_v24 = vcvt.s32.f32 %v110_v18  ;;  %v127_v25 = vcvt.s32.f32 %v111_v19  ;;  %v326_v30 = vld [vmem:[%s1352_s3 + $0x40] sm:$0xff]  ;;  %v331_v32 = vld [vmem:[%s1352_s3 + $0x68] sm:$0xff]  ;;  %v329_v37 = vld [vmem:[%s1352_s3 + $0x58] sm:$0xff]  ;;  %v128_v41 = vcvt.s32.f32 %v112_v35  ;;  %v129_v42 = vcvt.s32.f32 %v113_v36 }
  0x17   :  { %v114_v22 = vcvt.s32.f32 %v98_v16  ;;  %v115_v23 = vcvt.s32.f32 %v99_v17  ;;  %v332_v38 = vld [vmem:[%s1352_s3 + $0x70] sm:$0xff]  ;;  %v116_v39 = vcvt.s32.f32 %v100_v33  ;;  %v117_v40 = vcvt.s32.f32 %v101_v34  ;;  %v325_v45 = vld [vmem:[%s1352_s3 + $0x38] sm:$0xff]  ;;  %v95_v46 = vld [vmem:[#allocation3 + $0x8] sm:$0xff] }
  0x18   :  { %v136_v29 = vpack.c.bf16 %v127_v25, %v126_v24  ;;  %v137_v44 = vpack.c.bf16 %v129_v42, %v128_v41  ;;  %v102_v47 = vunpack.c.0.s8 %v95_v46  ;;  %v103_v48 = vunpack.c.1.s8 %v95_v46  ;;  %v328_v49 = vld [vmem:[%s1352_s3 + $0x50] sm:$0xff]  ;;  %v975_v63 = vld [vmem:[#allocation8 + $0x38] sm:$0xff]  ;;  %v973_v2 = vld [vmem:[#allocation8 + $0x28] sm:$0xff] }
  0x19   :  { %341 = vperm.xlu0 %1056, %v319_v6   ;;  %v130_v28 = vpack.c.bf16 %v115_v23, %v114_v22  ;;  %v131_v43 = vpack.c.bf16 %v117_v40, %v116_v39  ;;  %v104_v53 = vunpack.c.2.s8 %v95_v46  ;;  %v105_v54 = vunpack.c.3.s8 %v95_v46  ;;  %v96_v58 = vld [vmem:[#allocation3 + $0x10] sm:$0xff]  ;;  %683 = vmatpush.bf16.msra.mxu2 %v975_v63  ;;  %v959_v3 = vld [vmem:[#allocation6 + $0x38] sm:$0xff]  ;;  %v972_v6 = vld [vmem:[#allocation8 + $0x20] sm:$0xff] }
  0x1a   :  { %220 = vmatpush.bf16.msra.mxu0 %v949_v5  ;;  %1025 = vmatpush.bf16.msra.mxu3 %v949_v5  ;;  %v118_v50 = vcvt.s32.f32 %v102_v47  ;;  %v119_v51 = vcvt.s32.f32 %v103_v48  ;;  %v106_v59 = vunpack.c.0.s8 %v96_v58  ;;  %v107_v60 = vunpack.c.1.s8 %v96_v58  ;;  %v974_v1 = vld [vmem:[#allocation8 + $0x30] sm:$0xff]  ;;  %v957_v12 = vld [vmem:[#allocation6 + $0x28] sm:$0xff]  ;;  %v956_v14 = vld [vmem:[#allocation6 + $0x20] sm:$0xff] }
  0x1b   :  { %351 = vperm.xlu1 %1057, %v321_v7   ;;  %v120_v55 = vcvt.s32.f32 %v104_v53  ;;  %v121_v56 = vcvt.s32.f32 %v105_v54  ;;  %v108_v4 = vunpack.c.2.s8 %v96_v58  ;;  %v109_v5 = vunpack.c.3.s8 %v96_v58  ;;  %506 = vmatpush.bf16.msra.mxu1 %v959_v3  ;;  %v969_v15 = vld [vmem:[#allocation8 + $0x8] sm:$0xff]  ;;  %v955_v16 = vld [vmem:[#allocation6 + $0x18] sm:$0xff]  ;;  %v968_v17 = vld [vmem:[#allocation8] sm:$0xff] }
  0x1c   :  { %401 = vperm.xlu2 %1058, %v331_v32   ;;  %v132_v52 = vpack.c.bf16 %v119_v51, %v118_v50  ;;  %v122_v61 = vcvt.s32.f32 %v106_v59  ;;  %v123_v62 = vcvt.s32.f32 %v107_v60  ;;  %v960_v18 = vld [vmem:[%s1351_s2] sm:$0xff]  ;;  %v954_v19 = vld [vmem:[#allocation6 + $0x10] sm:$0xff]  ;;  %v961_v22 = vld [vmem:[%s1351_s2 + $0x8] sm:$0xff] }
  0x1d   :  { %v133_v57 = vpack.c.bf16 %v121_v56, %v120_v55  ;;  %684 = vmatpush.bf16.msra.mxu2 %v974_v1  ;;  %v124_v7 = vcvt.s32.f32 %v108_v4  ;;  %v962_v24 = vld [vmem:[%s1351_s2 + $0x10] sm:$0xff]  ;;  %v964_v53 = vld [vmem:[%s1351_s2 + $0x20] sm:$0xff] }
  0x1e   :  { %221 = vmatpush.bf16.msra.mxu0 %v948_v8  ;;  %1026 = vmatpush.bf16.msra.mxu3 %v948_v8  ;;  %v134_v0 = vpack.c.bf16 %v123_v62, %v122_v61  ;;  %v125_v8 = vcvt.s32.f32 %v109_v5  ;;  %v966_v61 = vld [vmem:[%s1351_s2 + $0x30] sm:$0xff]  ;;  %v965_v62 = vld [vmem:[%s1351_s2 + $0x28] sm:$0xff] }
  0x21   :  { %356 = vperm.xlu0 %1056, %v322_v10   ;;  %685 = vmatpush.bf16.msra.mxu2 %v973_v2  ;;  %v971_v10 = vld [vmem:[#allocation8 + $0x18] sm:$0xff] }
  0x22   :  { %222 = vmatpush.bf16.msra.mxu0 %v947_v9  ;;  %1027 = vmatpush.bf16.msra.mxu3 %v947_v9  ;;  %v958_v9 = vld [vmem:[#allocation6 + $0x30] sm:$0xff] }
  0x23   :  { %361 = vperm.xlu1 %1057, %v323_v11   ;;  %v135_v11 = vpack.c.bf16 %v125_v8, %v124_v7  ;;  %507 = vmatpush.bf16.msra.mxu1 %v958_v9 }
  0x24   :  { %406 = vperm.xlu2 %1058, %v332_v38   ;;  %v963_v38 = vld [vmem:[%s1351_s2 + $0x18] sm:$0xff] }
  0x25   :  { %686 = vmatpush.bf16.msra.mxu2 %v972_v6 }
  0x26   :  { %223 = vmatpush.bf16.msra.mxu0 %v946_v13  ;;  %1028 = vmatpush.bf16.msra.mxu3 %v946_v13  ;;  %v970_v13 = vld [vmem:[#allocation8 + $0x10] sm:$0xff] }
  0x27   :  { %508 = vmatpush.bf16.msra.mxu1 %v957_v12 }
  0x29   :  { %411 = vperm.xlu0 %1056, %v333_v21   ;;  %687 = vmatpush.bf16.msra.mxu2 %v971_v10  ;;  %v952_v21 = vld [vmem:[#allocation6] sm:$0xff] }
  0x2a   :  { %224 = vmatpush.bf16.msra.mxu0 %v945_v20  ;;  %1029 = vmatpush.bf16.msra.mxu3 %v945_v20  ;;  %v953_v20 = vld [vmem:[#allocation6 + $0x8] sm:$0xff] }
  0x2b   :  { %366 = vperm.xlu1 %1057, %v324_v26   ;;  %509 = vmatpush.bf16.msra.mxu1 %v956_v14 }
  0x2c   :  { %371 = vperm.xlu2 %1058, %v325_v45  }
  0x2d   :  { %688 = vmatpush.bf16.msra.mxu2 %v970_v13 }
  0x2e   :  { %225 = vmatpush.bf16.msra.mxu0 %v944_v27  ;;  %1030 = vmatpush.bf16.msra.mxu3 %v944_v27 }
  0x2f   :  { %510 = vmatpush.bf16.msra.mxu1 %v955_v16 }
  0x31   :  { %226 = vmatmul.bf16.vlgmr.msra.gmra.mxu0 %v130_v28  ;;  %256 = vmatmul.bf16.vlgmr.msra.gmra.mxu3 %v136_v29 }
  0x32   :  { %376 = vperm.xlu0 %1056, %v326_v30   ;;  %1031 = vmatpush.bf16.msrb.mxu3 %v959_v3 }
  0x33   :  { %381 = vperm.xlu1 %1057, %v327_v31   ;;  %689 = vmatpush.bf16.msra.mxu2 %v969_v15 }
  0x34   :  { %386 = vperm.xlu2 %1058, %v328_v49   ;;  %511 = vmatpush.bf16.msra.mxu1 %v954_v19 }
  0x36   :  { %1032 = vmatpush.bf16.msrb.mxu3 %v958_v9 }
  0x37   :  { %690 = vmatpush.bf16.msra.mxu2 %v968_v17 }
  0x38   :  { %512 = vmatpush.bf16.msra.mxu1 %v953_v20 }
  0x3a   :  { %391 = vperm.xlu0 %1056, %v329_v37   ;;  %1033 = vmatpush.bf16.msrb.mxu3 %v957_v12 }
  0x3b   :  { %691 = vmatmul.bf16.vlgmr.msra.gmra.mxu2 %v960_v18 }
  0x3c   :  { %513 = vmatpush.bf16.msra.mxu1 %v952_v21 }
  0x3e   :  { %1034 = vmatpush.bf16.msrb.mxu3 %v956_v14 }
  0x41   :  { %231 = vmatmul.bf16.gmra.mxu0 %v131_v43  ;;  %261 = vmatmul.bf16.gmra.mxu3 %v137_v44 }
  0x42   :  { %1035 = vmatpush.bf16.msrb.mxu3 %v955_v16 }
  0x46   :  { %1036 = vmatpush.bf16.msrb.mxu3 %v954_v19 }
  0x4a   :  { %1037 = vmatpush.bf16.msrb.mxu3 %v953_v20 }
  0x4b   :  { %696 = vmatmul.bf16.gmra.mxu2 %v961_v22 }
  0x4e   :  { %1038 = vmatpush.bf16.msrb.mxu3 %v952_v21 }
  0x51   :  { %236 = vmatmul.bf16.gmra.mxu0 %v132_v52 }
  0x52   :  { %1039 = vmatpush.bf16.msra.mxu3 %v975_v63 }
  0x56   :  { %1040 = vmatpush.bf16.msra.mxu3 %v974_v1 }
  0x5a   :  { %1041 = vmatpush.bf16.msra.mxu3 %v973_v2 }
  0x5b   :  { %701 = vmatmul.bf16.gmra.mxu2 %v962_v24 }
  0x5e   :  { %1042 = vmatpush.bf16.msra.mxu3 %v972_v6  ;;  %v967_v6 = vld [vmem:[%s1351_s2 + $0x38] sm:$0xff] }
  0x61   :  { %241 = vmatmul.bf16.gmra.mxu0 %v133_v57 }
  0x62   :  { %1043 = vmatpush.bf16.msra.mxu3 %v971_v10 }
  0x66   :  { %1044 = vmatpush.bf16.msra.mxu3 %v970_v13 }
  0x6a   :  { %1045 = vmatpush.bf16.msra.mxu3 %v969_v15 }
  0x6b   :  { %706 = vmatmul.bf16.gmra.mxu2 %v963_v38 }
  0x6e   :  { %v397_v26 = vpop.permute.xlu2 %396  ;;  %1046 = vmatpush.bf16.msra.mxu3 %v968_v17 }
  0x71   :  { %246 = vmatmul.bf16.gmra.mxu0 %v134_v0 }
  0x76   :  { %v402_v35 = vpop.permute.xlu2 %401 }
  0x7b   :  { %711 = vmatmul.bf16.gmra.mxu2 %v964_v53 }
  0x7e   :  { %v407_v48 = vpop.permute.xlu2 %406 }
  0x81   :  { %251 = vmatmul.bf16.gmra.mxu0 %v135_v11 }
  0x83   :  { %v337_v23 = vpop.permute.xlu0 %336 }
  0x85   :  { %v347_v33 = vpop.permute.xlu1 %346 }
  0x86   :  { %v372_v1 = vpop.permute.xlu2 %371 }
  0x8b   :  { %v342_v28 = vpop.permute.xlu0 %341  ;;  %716 = vmatmul.bf16.gmra.mxu2 %v965_v62 }
  0x8d   :  { %v352_v43 = vpop.permute.xlu1 %351 }
  0x8e   :  { %v387_v15 = vpop.permute.xlu2 %386 }
  0x93   :  { %v357_v41 = vpop.permute.xlu0 %356 }
  0x95   :  { %v362_v56 = vpop.permute.xlu1 %361 }
  0x9b   :  { %v412_v49 = vpop.permute.xlu0 %411 }
  0x9d   :  { %v367_v0 = vpop.permute.xlu1 %366 }
  0xa4   :  { %v377_v8 = vpop.permute.xlu0 %376 }
  0xa5   :  { %v382_v9 = vpop.permute.xlu1 %381 }
  0xac   :  { %v392_v16 = vpop.permute.xlu0 %391 }
  0xae   :  { %v227_v25 = vpop.f32.mrf.mxu0 }
  0xaf   :  { %v414_v30 = vmul.f32 %v337_v23, %v227_v25  ;;  %v1325_v25 = vld [vmem:[%s1354_s5] ss:$0 sm:$0xff]  ;;  %s1170_s5 = smov [#allocation9]  }
  0xb0   :  { %s800_s11 = sshll.u32 %s1170_s5, 4  ;;  %s801_s11 = int_to_ptr.vmem [resolvable:$true] %s800_s11 }
  0xb4   :  { %v257_v27 = vpop.f32.mrf.mxu3 }
  0xb5   :  { %v426_v34 = vmul.f32 %v397_v26, %v257_v27 }
  0xb6   :  { %v229_v29 = vpop.f32.mrf.mxu0 }
  0xb7   :  { %v415_v31 = vmul.f32 %v342_v28, %v229_v29 }
  0xb9   :  { %v430_v32 = vpack.c.bf16 %v415_v31, %v414_v30 }
  0xbb   :  { %514 = vmatmul.bf16.vlgmr.msra.gmra.mxu1 %v430_v32 }
  0xbc   :  { %v259_v36 = vpop.f32.mrf.mxu3 }
  0xbd   :  { %v427_v37 = vmul.f32 %v402_v35, %v259_v36 }
  0xbe   :  { %v232_v39 = vpop.f32.mrf.mxu0  ;;  %v692_v21 = vpop.f32.mrf.mxu2 }
  0xbf   :  { %v436_v40 = vpack.c.bf16 %v427_v37, %v426_v34  ;;  %v416_v45 = vmul.f32 %v347_v33, %v232_v39 }
  0xc1   :  { %544 = vmatmul.bf16.vlgmr.msrb.gmra.mxu3 %v436_v40 }
  0xc4   :  { %v262_v42 = vpop.f32.mrf.mxu3 }
  0xc5   :  { %v428_v51 = vmul.f32 %v407_v48, %v262_v42 }
  0xc6   :  { %v234_v44 = vpop.f32.mrf.mxu0  ;;  %v694_v22 = vpop.f32.mrf.mxu2 }
  0xc7   :  { %v417_v46 = vmul.f32 %v352_v43, %v234_v44 }
  0xc9   :  { %v431_v47 = vpack.c.bf16 %v417_v46, %v416_v45 }
  0xcb   :  { %519 = vmatmul.bf16.gmra.mxu1 %v431_v47 }
  0xcc   :  { %v264_v50 = vpop.f32.mrf.mxu3 }
  0xcd   :  { %v429_v52 = vmul.f32 %v412_v49, %v264_v50 }
  0xce   :  { %v237_v54 = vpop.f32.mrf.mxu0  ;;  %v697_v24 = vpop.f32.mrf.mxu2 }
  0xcf   :  { %v437_v55 = vpack.c.bf16 %v429_v52, %v428_v51  ;;  %v418_v58 = vmul.f32 %v357_v41, %v237_v54 }
  0xd1   :  { %549 = vmatmul.bf16.gmra.mxu3 %v437_v55 }
  0xd6   :  { %v239_v57 = vpop.f32.mrf.mxu0  ;;  %v699_v30 = vpop.f32.mrf.mxu2 }
  0xd7   :  { %v419_v59 = vmul.f32 %v362_v56, %v239_v57 }
  0xd9   :  { %v432_v60 = vpack.c.bf16 %v419_v59, %v418_v58 }
  0xdb   :  { %524 = vmatmul.bf16.gmra.mxu1 %v432_v60 }
  0xde   :  { %v242_v63 = vpop.f32.mrf.mxu0  ;;  %v702_v38 = vpop.f32.mrf.mxu2 }
  0xdf   :  { %v420_v3 = vmul.f32 %v367_v0, %v242_v63 }
  0xe1   :  { %721 = vmatmul.bf16.vlgmr.msra.gmra.mxu3 %v966_v61 }
  0xe6   :  { %v244_v2 = vpop.f32.mrf.mxu0  ;;  %v704_v47 = vpop.f32.mrf.mxu2 }
  0xe7   :  { %v421_v4 = vmul.f32 %v372_v1, %v244_v2 }
  0xe9   :  { %v433_v5 = vpack.c.bf16 %v421_v4, %v420_v3 }
  0xeb   :  { %529 = vmatmul.bf16.gmra.mxu1 %v433_v5 }
  0xee   :  { %v247_v7 = vpop.f32.mrf.mxu0  ;;  %v707_v53 = vpop.f32.mrf.mxu2 }
  0xef   :  { %v422_v11 = vmul.f32 %v377_v8, %v247_v7 }
  0xf1   :  { %726 = vmatmul.bf16.gmra.mxu3 %v967_v6 }
  0xf6   :  { %v249_v10 = vpop.f32.mrf.mxu0  ;;  %v709_v63 = vpop.f32.mrf.mxu2 }
  0xf7   :  { %v423_v12 = vmul.f32 %v382_v9, %v249_v10 }
  0xf9   :  { %v434_v13 = vpack.c.bf16 %v423_v12, %v422_v11 }
  0xfb   :  { %534 = vmatmul.bf16.gmra.mxu1 %v434_v13 }
  0xfe   :  { %v252_v14 = vpop.f32.mrf.mxu0  ;;  %v712_v12 = vpop.f32.mrf.mxu2 }
  0xff   :  { %v424_v18 = vmul.f32 %v387_v15, %v252_v14 }
 0x106   :  { %v254_v17 = vpop.f32.mrf.mxu0 }
 0x107   :  { %v425_v19 = vmul.f32 %v392_v16, %v254_v17 }
 0x109   :  { %v435_v20 = vpack.c.bf16 %v425_v19, %v424_v18 }
 0x10b   :  { %539 = vmatmul.bf16.gmra.mxu1 %v435_v20 }
 0x138   :  { %v515_v23 = vpop.f32.mrf.mxu1 }
 0x139   :  { %v516_v26 = vadd.f32 %v1325_v25, %v515_v23 }
 0x13b   :  { %v732_v28 = vadd.f32 %v692_v21, %v516_v26 }
 0x13d   :  { %v748_v33 = vmax.f32 %v732_v28, 0.0 }
 0x140   :  { %v517_v27 = vpop.f32.mrf.mxu1 }
 0x141   :  { %v518_v29 = vadd.f32 %v1325_v25, %v517_v27 }
 0x143   :  { %v733_v31 = vadd.f32 %v694_v22, %v518_v29 }
 0x144   :  { %v545_v32 = vpop.f32.mrf.mxu3 }
 0x145   :  { %v749_v34 = vmax.f32 %v733_v31, 0.0  ;;  %v546_v62 = vadd.f32 %v1325_v25, %v545_v32 }
 0x147   :  { %v979_v35 = vpack.c.bf16 %v749_v34, %v748_v33 }
 0x148   :  { %v520_v36 = vpop.f32.mrf.mxu1 }
 0x149   :  { %980 = vst [vmem:[#allocation9] sm:$0xff] %v979_v35   ;;  %v521_v39 = vadd.f32 %v1325_v25, %v520_v36 }
 0x14b   :  { %v734_v41 = vadd.f32 %v697_v24, %v521_v39  ;;  %v714_v24 = vpop.f32.mrf.mxu2 }
 0x14c   :  { %v547_v37 = vpop.f32.mrf.mxu3 }
 0x14d   :  { %v750_v45 = vmax.f32 %v734_v41, 0.0  ;;  %v548_v0 = vadd.f32 %v1325_v25, %v547_v37 }
 0x150   :  { %v522_v40 = vpop.f32.mrf.mxu1 }
 0x151   :  { %v523_v42 = vadd.f32 %v1325_v25, %v522_v40 }
 0x153   :  { %v735_v43 = vadd.f32 %v699_v30, %v523_v42  ;;  %v717_v36 = vpop.f32.mrf.mxu2 }
 0x154   :  { %v550_v44 = vpop.f32.mrf.mxu3 }
 0x155   :  { %v751_v46 = vmax.f32 %v735_v43, 0.0  ;;  %v551_v18 = vadd.f32 %v1325_v25, %v550_v44 }
 0x157   :  { %v984_v48 = vpack.c.bf16 %v751_v46, %v750_v45 }
 0x158   :  { %v525_v49 = vpop.f32.mrf.mxu1 }
 0x159   :  { %1016 = vst [vmem:[#allocation9 + $0x8] sm:$0xff] %v984_v48   ;;  %v526_v51 = vadd.f32 %v1325_v25, %v525_v49 }
 0x15b   :  { %v736_v54 = vadd.f32 %v702_v38, %v526_v51  ;;  %v719_v42 = vpop.f32.mrf.mxu2 }
 0x15c   :  { %v552_v50 = vpop.f32.mrf.mxu3 }
 0x15d   :  { %v752_v58 = vmax.f32 %v736_v54, 0.0  ;;  %v553_v19 = vadd.f32 %v1325_v25, %v552_v50 }
 0x160   :  { %v527_v52 = vpop.f32.mrf.mxu1 }
 0x161   :  { %v528_v55 = vadd.f32 %v1325_v25, %v527_v52 }
 0x163   :  { %v737_v56 = vadd.f32 %v704_v47, %v528_v55 }
 0x164   :  { %v722_v57 = vpop.f32.mrf.mxu3 }
 0x165   :  { %v753_v59 = vmax.f32 %v737_v56, 0.0  ;;  %v744_v1 = vadd.f32 %v722_v57, %v546_v62 }
 0x167   :  { %v989_v60 = vpack.c.bf16 %v753_v59, %v752_v58  ;;  %v760_v5 = vmax.f32 %v744_v1, 0.0 }
 0x168   :  { %v530_v61 = vpop.f32.mrf.mxu1 }
 0x169   :  { %1017 = vst [vmem:[#allocation9 + $0x10] sm:$0xff] %v989_v60   ;;  %v531_v3 = vadd.f32 %v1325_v25, %v530_v61 }
 0x16b   :  { %v738_v8 = vadd.f32 %v707_v53, %v531_v3 }
 0x16c   :  { %v724_v2 = vpop.f32.mrf.mxu3 }
 0x16d   :  { %v745_v4 = vadd.f32 %v724_v2, %v548_v0  ;;  %v754_v14 = vmax.f32 %v738_v8, 0.0 }
 0x16f   :  { %v761_v6 = vmax.f32 %v745_v4, 0.0 }
 0x170   :  { %v532_v7 = vpop.f32.mrf.mxu1 }
 0x171   :  { %v1009_v9 = vpack.c.bf16 %v761_v6, %v760_v5  ;;  %v533_v10 = vadd.f32 %v1325_v25, %v532_v7 }
 0x173   :  { %1021 = vst [vmem:[#allocation9 + $0x30] sm:$0xff] %v1009_v9   ;;  %v739_v11 = vadd.f32 %v709_v63, %v533_v10 }
 0x174   :  { %v727_v13 = vpop.f32.mrf.mxu3 }
 0x175   :  { %v755_v15 = vmax.f32 %v739_v11, 0.0  ;;  %v746_v20 = vadd.f32 %v727_v13, %v551_v18 }
 0x177   :  { %v994_v16 = vpack.c.bf16 %v755_v15, %v754_v14  ;;  %v762_v26 = vmax.f32 %v746_v20, 0.0 }
 0x178   :  { %v535_v17 = vpop.f32.mrf.mxu1 }
 0x179   :  { %1018 = vst [vmem:[#allocation9 + $0x18] sm:$0xff] %v994_v16   ;;  %v536_v22 = vadd.f32 %v1325_v25, %v535_v17 }
 0x17b   :  { %v740_v29 = vadd.f32 %v712_v12, %v536_v22 }
 0x17c   :  { %v729_v21 = vpop.f32.mrf.mxu3 }
 0x17d   :  { %v747_v23 = vadd.f32 %v729_v21, %v553_v19  ;;  %v756_v33 = vmax.f32 %v740_v29, 0.0 }
 0x17f   :  { %v763_v27 = vmax.f32 %v747_v23, 0.0 }
 0x180   :  { %v537_v28 = vpop.f32.mrf.mxu1 }
 0x181   :  { %v1014_v30 = vpack.c.bf16 %v763_v27, %v762_v26  ;;  %v538_v31 = vadd.f32 %v1325_v25, %v537_v28 }
 0x183   :  { %1022 = vst [vmem:[#allocation9 + $0x38] sm:$0xff] %v1014_v30   ;;  %v741_v32 = vadd.f32 %v714_v24, %v538_v31 }
 0x185   :  { %v757_v34 = vmax.f32 %v741_v32, 0.0 }
 0x187   :  { %v999_v35 = vpack.c.bf16 %v757_v34, %v756_v33 }
 0x188   :  { %v540_v37 = vpop.f32.mrf.mxu1 }
 0x189   :  { %1019 = vst [vmem:[#allocation9 + $0x20] sm:$0xff] %v999_v35   ;;  %v541_v38 = vadd.f32 %v1325_v25, %v540_v37 }
 0x18b   :  { %v742_v40 = vadd.f32 %v717_v36, %v541_v38 }
 0x18d   :  { %v758_v44 = vmax.f32 %v742_v40, 0.0 }
 0x190   :  { %v542_v39 = vpop.f32.mrf.mxu1 }
 0x191   :  { %v543_v41 = vadd.f32 %v1325_v25, %v542_v39 }
 0x193   :  { %v743_v43 = vadd.f32 %v719_v42, %v543_v41 }
 0x195   :  { %v759_v45 = vmax.f32 %v743_v43, 0.0 }
 0x197   :  { %v1004_v46 = vpack.c.bf16 %v759_v45, %v758_v44 }
 0x199   :  { %1020 = vst [vmem:[#allocation9 + $0x28] sm:$0xff] %v1004_v46  }
 0x19a   :  { %808 = dma.vmem_to_hbm [thread:$0]  %s801_s11, 1024, %s803_s4, [#allocation5], %s1163_s9, %s1163_s9, %s1164_s10  }
 0x19b   :  { %1160 = dma.done.wait [#allocation5], 1024  }
 0x19c   :  { %1161 = vsyncadd [#allocation5], 4294966272 }
 0x19d   :  { %813 = vsyncpa [#allocation4], 1 }
 0x19e   :  { %814 = vsyncpa [#allocation7], 1 }
 0x19f   :  { %815 = vsyncpa [#allocation5], 1 }

</bundles_post_ra>
